<compile_context>
chip_gen: v7x
topology: tpu7x:2x2x1
jax: 0.10.0
libtpu: 0.0.40
codegen_flags: <defaults>
</compile_context>

<pallas_src>
import functools

import jax
import jax.numpy as jnp
from jax import lax
from jax.experimental import pallas as pl
from jax.experimental.pallas import tpu as pltpu


def tsc_activated_kernel(x_ref, w_dw_ref, w_pw_ref, shift_ref, o_ref, *,
                         kernel_size, dilation, pad):
    """One (B_TILE, C, L) tile per grid step; fori_loop over batch elements.

    x_ref:     (B_TILE, C_in, L)      unpadded input
    w_dw_ref:  (C_in, K)              depthwise conv weights
    w_pw_ref:  (C_out, C_in)          pointwise weights with BN scale folded in
    shift_ref: (C_out, 1)             folded shift (b_dw, b_pw, BN mean, beta)
    o_ref:     (B_TILE, C_out, L_out)
    """
    b_tile, _, length = x_ref.shape
    l_out = o_ref.shape[-1]

    # Hoisted invariants (JAX does not CSE broadcasts inside the loop).
    w_dw = w_dw_ref[...].astype(jnp.float32)                  # (C_in, K)
    w_pw = w_pw_ref[...].astype(jnp.float32)                  # (C_out, C_in)
    shift = shift_ref[...]                                     # (C_out, 1)
    lane = lax.broadcasted_iota(jnp.int32, (1, length), 1)

    def body(b, carry):
        # Live set per iteration is only ~(C_in + C_out) * L floats, so large
        # batch tiles never spill the 256 KiB vreg file.
        x = x_ref[b].astype(jnp.float32)                       # (C_in, L)

        # Depthwise conv as K lane-rotations (XLU) of one batch element.
        # Columns that wrapped around the rotation are masked to zero, which
        # reproduces the Conv1d zero 'padding='.
        acc = jnp.zeros_like(x)
        for k in range(kernel_size):                            # static, K small
            offset = k * dilation - pad                         # src idx = t + offset
            if offset == 0:
                shifted = x
            else:
                shifted = pltpu.roll(x, shift=(-offset) % length, axis=1)
            term = shifted * w_dw[:, k][:, None]                # (C_in, L)
            if offset < 0:
                term = jnp.where(lane >= -offset, term, 0.0)
            elif offset > 0:
                term = jnp.where(lane < length - offset, term, 0.0)
            acc = acc + term

        # Pointwise 1x1 conv (channel mixing on the MXU, BN scale pre-folded
        # into the weights) + shift + ReLU; lane-dense full-width store.
        y = jnp.dot(w_pw, acc, preferred_element_type=jnp.float32)
        y = y[:, :l_out] + shift
        o_ref[b] = jnp.maximum(y, 0.0).astype(o_ref.dtype)
        return carry

    lax.fori_loop(0, b_tile, body, 0)


def _tpu_generation_info():
    """(vmem_capacity_bytes, tensorcores_per_chip) with safe fallbacks."""
    vmem_bytes = None
    try:
        vmem_bytes = int(pltpu.get_tpu_info().vmem_capacity_bytes)
    except Exception:
        pass
    kind = ""
    try:
        kind = jax.devices()[0].device_kind.lower()
    except Exception:
        pass
    if vmem_bytes is None:
        # 128 MiB on v5e/v6e, 64 MiB per TensorCore on v7x; default conservative.
        big = any(t in kind for t in ("v5", "v6"))
        vmem_bytes = (128 if big else 64) * 1024 * 1024
    # v5e/v6e have a single TensorCore per chip; keep the multi-TC default (2)
    # otherwise so ("parallel",) grid sharding stays possible on v7x.
    single_tc = any(t in kind for t in ("v5e", "v5 lite", "v5lite",
                                        "v6e", "v6 lite", "v6lite"))
    return vmem_bytes, (1 if single_tc else 2)


def _choose_batch_tile(n, per_elem_bytes, max_bytes, min_grid):
    """Largest divisor of n whose (in+out) tile fits max_bytes and keeps the
    grid length >= min_grid (when n allows it)."""
    best = 1
    for d in range(1, n + 1):
        if n % d:
            continue
        if d > 1 and d * per_elem_bytes > max_bytes:
            continue
        if n // d < min_grid and n >= min_grid:
            continue
        best = d
    return best


def tsc_activated(x, w_dw, b_dw, w_pw, b_pw, bn_gamma, bn_beta, bn_mean,
                  bn_var, *, kernel_size, dilation=1, eps=1e-5,
                  batch_tile=None):
    """x: (N, C_in, L).  Returns (N, C_out, L_out) in x.dtype."""
    N, C_in, L = x.shape
    C_out = w_pw.shape[0]
    pad = dilation * (kernel_size - 1) // 2
    L_out = L + 2 * pad - dilation * (kernel_size - 1)

    # Fold BN (eval) + both conv biases:
    #   BN(w_pw @ (dw + b_dw) + b_pw) = (w_pw * scale) @ dw + shift
    scale = (bn_gamma / jnp.sqrt(bn_var + eps)).astype(jnp.float32)
    w_pw_scaled = (w_pw.astype(jnp.float32) * scale[:, None])
    shift = (w_pw @ b_dw + b_pw - bn_mean) * scale + bn_beta
    shift = shift.reshape(C_out, 1).astype(jnp.float32)

    # Generation-aware tile budget: per-step (in + out) tile <= vmem/8, and a
    # matching scoped-VMEM limit (double-buffered in+out stays <= vmem/2).
    vmem_bytes, n_tc = _tpu_generation_info()
    tile_budget = vmem_bytes // 8
    vmem_limit = vmem_bytes // 2
    itemsize = jnp.dtype(x.dtype).itemsize
    per_elem = (C_in * L + C_out * L_out) * itemsize
    if batch_tile is None:
        batch_tile = _choose_batch_tile(N, per_elem, tile_budget, min_grid=n_tc)
    assert N % batch_tile == 0
    grid = (N // batch_tile,)

    kernel = functools.partial(tsc_activated_kernel,
                               kernel_size=kernel_size,
                               dilation=dilation,
                               pad=pad)

    return pl.pallas_call(
        kernel,
        out_shape=jax.ShapeDtypeStruct((N, C_out, L_out), x.dtype),
        grid_spec=pltpu.PrefetchScalarGridSpec(
            num_scalar_prefetch=0,
            grid=grid,
            in_specs=[
                pl.BlockSpec((batch_tile, C_in, L), lambda g: (g, 0, 0)),
                pl.BlockSpec((C_in, kernel_size), lambda g: (0, 0)),
                pl.BlockSpec((C_out, C_in), lambda g: (0, 0)),
                pl.BlockSpec((C_out, 1), lambda g: (0, 0)),
            ],
            out_specs=pl.BlockSpec((batch_tile, C_out, L_out),
                                   lambda g: (g, 0, 0)),
        ),
        compiler_params=pltpu.CompilerParams(
            dimension_semantics=("parallel",),
            vmem_limit_bytes=vmem_limit),
    )(x, w_dw, w_pw_scaled, shift)


def reference(x, w_dw, b_dw, w_pw, b_pw, bn_gamma, bn_beta, bn_mean, bn_var,
              *, kernel_size, dilation=1, eps=1e-5):
    """Pure-JAX reference (lax conv) matching PyTorch TSCActivated (BN eval)."""
    N, C_in, L = x.shape
    pad = dilation * (kernel_size - 1) // 2
    dw = lax.conv_general_dilated(
        x, w_dw.reshape(C_in, 1, kernel_size),
        window_strides=(1,), padding=[(pad, pad)],
        rhs_dilation=(dilation,), feature_group_count=C_in,
        dimension_numbers=("NCH", "OIH", "NCH"))
    dw = dw + b_dw.reshape(1, C_in, 1)
    pw = jnp.einsum("oc,ncl->nol", w_pw, dw) + b_pw.reshape(1, -1, 1)
    scale = (bn_gamma / jnp.sqrt(bn_var + eps)).reshape(1, -1, 1)
    shift = bn_beta.reshape(1, -1, 1) - bn_mean.reshape(1, -1, 1) * scale
    return jnp.maximum(pw * scale + shift, 0.0)


def _run_case(key, N, C_in, C_out, L, kernel_size, dilation,
              dtype=jnp.float32, atol=1e-4, rtol=1e-4):
    k = jax.random.split(key, 9)
    x = jax.random.normal(k[0], (N, C_in, L), dtype=jnp.float32)
    w_dw = jax.random.normal(k[1], (C_in, kernel_size), jnp.float32) * 0.3
    b_dw = jax.random.normal(k[2], (C_in,), jnp.float32) * 0.1
    w_pw = jax.random.normal(k[3], (C_out, C_in), jnp.float32) * 0.2
    b_pw = jax.random.normal(k[4], (C_out,), jnp.float32) * 0.1
    bn_gamma = 1.0 + 0.1 * jax.random.normal(k[5], (C_out,), jnp.float32)
    bn_beta = 0.1 * jax.random.normal(k[6], (C_out,), jnp.float32)
    bn_mean = 0.05 * jax.random.normal(k[7], (C_out,), jnp.float32)
    bn_var = jnp.abs(1.0 + 0.1 * jax.random.normal(k[8], (C_out,), jnp.float32))

    out = tsc_activated(x.astype(dtype), w_dw, b_dw, w_pw, b_pw, bn_gamma,
                        bn_beta, bn_mean, bn_var,
                        kernel_size=kernel_size, dilation=dilation)
    out = jax.block_until_ready(out)
    ref = reference(x, w_dw, b_dw, w_pw, b_pw, bn_gamma, bn_beta, bn_mean,
                    bn_var, kernel_size=kernel_size, dilation=dilation)
    assert out.shape == ref.shape, (out.shape, ref.shape)
    assert out.dtype == jnp.dtype(dtype), out.dtype
    err = float(jnp.max(jnp.abs(out.astype(jnp.float32) - ref)))
    tol = atol + rtol * float(jnp.max(jnp.abs(ref)))
    assert err <= tol, (err, tol)


if __name__ == "__main__":
    key = jax.random.PRNGKey(0)
    keys = jax.random.split(key, 4)
    # 'same' padding (fully lane-dense output).
    _run_case(keys[0], N=8, C_in=8, C_out=16, L=256, kernel_size=3, dilation=1)
    # dilated depthwise conv.
    _run_case(keys[1], N=4, C_in=8, C_out=16, L=256, kernel_size=3, dilation=2)
    # asymmetric-pad case (dilation*(K-1) odd): output length L-1.
    _run_case(keys[2], N=4, C_in=8, C_out=16, L=256, kernel_size=2, dilation=1)
    # bf16 I/O path (halves HBM traffic; f32 in-kernel math and accumulation).
    _run_case(keys[3], N=8, C_in=8, C_out=16, L=256, kernel_size=3, dilation=1,
              dtype=jnp.bfloat16, atol=5e-2, rtol=5e-2)
    print("KERNEL_OK")
</pallas_src>

<mosaic_0001>
module attributes {stable_mosaic.version = 11 : i64} {
  func.func @tsc_activated_kernel(%arg0: i32, %arg1: memref<4x8x256xf32, #tpu.memory_space<vmem>>, %arg2: memref<8x3xf32, #tpu.memory_space<vmem>>, %arg3: memref<16x8xf32, #tpu.memory_space<vmem>>, %arg4: memref<16x1xf32, #tpu.memory_space<vmem>>, %arg5: memref<4x16x256xf32, #tpu.memory_space<vmem>>) attributes {dimension_semantics = [#tpu.dimension_semantics<parallel>], iteration_bounds = array<i64: 2>, scalar_prefetch = 0 : i64, scratch_operands = 0 : i64, tpu.core_type = #tpu.core_type<tc>, window_params = [{transform_indices = @transform_0, window_bounds = array<i64: 4, 8, 256>}, {pipeline_mode = #tpu.pipeline_mode<synchronous>, transform_indices = @transform_1, window_bounds = array<i64: 8, 3>}, {pipeline_mode = #tpu.pipeline_mode<synchronous>, transform_indices = @transform_2, window_bounds = array<i64: 16, 8>}, {pipeline_mode = #tpu.pipeline_mode<synchronous>, transform_indices = @transform_3, window_bounds = array<i64: 16, 1>}, {transform_indices = @transform_4, window_bounds = array<i64: 4, 16, 256>}]} {
    %c0 = arith.constant 0 : index
    %c0_0 = arith.constant 0 : index
    %0 = vector.load %arg2[%c0, %c0_0] : memref<8x3xf32, #tpu.memory_space<vmem>>, vector<8x3xf32>
    %c0_1 = arith.constant 0 : index
    %c0_2 = arith.constant 0 : index
    %1 = vector.load %arg3[%c0_1, %c0_2] : memref<16x8xf32, #tpu.memory_space<vmem>>, vector<16x8xf32>
    %c0_3 = arith.constant 0 : index
    %c0_4 = arith.constant 0 : index
    %2 = vector.load %arg4[%c0_3, %c0_4] : memref<16x1xf32, #tpu.memory_space<vmem>>, vector<16x1xf32>
    %3 = tpu.iota {dimensions = array<i32: 1>} : vector<1x256xi32>
    %c0_i32 = arith.constant 0 : i32
    %c4_i32 = arith.constant 4 : i32
    %4 = arith.addi %c0_i32, %c4_i32 : i32
    %c1_i32 = arith.constant 1 : i32
    scf.for %arg6 = %c0_i32 to %4 step %c1_i32  : i32 {
      %5 = arith.index_cast %arg6 : i32 to index
      %c0_6 = arith.constant 0 : index
      %c0_7 = arith.constant 0 : index
      %6 = vector.load %arg1[%5, %c0_6, %c0_7] : memref<4x8x256xf32, #tpu.memory_space<vmem>>, vector<1x8x256xf32>
      %7 = vector.shape_cast %6 : vector<1x8x256xf32> to vector<8x256xf32>
      %cst = arith.constant 0.000000e+00 : f32
      %8 = vector.broadcast %cst : f32 to vector<8x256xf32>
      %c1_i32_8 = arith.constant 1 : i32
      %9 = tpu.dynamic_rotate %7 by %c1_i32_8 dim 1 : vector<8x256xf32>, i32 -> vector<8x256xf32>
      %10 = vector.extract_strided_slice %0 {offsets = [0, 0], sizes = [8, 1], strides = [1, 1]} : vector<8x3xf32> to vector<8x1xf32>
      %11 = vector.shape_cast %10 : vector<8x1xf32> to vector<8xf32>
      %12 = vector.shape_cast %11 : vector<8xf32> to vector<8x1xf32>
      %13 = vector.broadcast %12 : vector<8x1xf32> to vector<8x256xf32>
      %14 = arith.mulf %9, %13 : vector<8x256xf32>
      %c1_i32_9 = arith.constant 1 : i32
      %15 = vector.broadcast %c1_i32_9 : i32 to vector<1x256xi32>
      %16 = arith.cmpi sge, %3, %15 : vector<1x256xi32>
      %cst_10 = arith.constant 0.000000e+00 : f32
      %17 = vector.shape_cast %16 : vector<1x256xi1> to vector<1x256xi1>
      %18 = vector.broadcast %17 : vector<1x256xi1> to vector<8x256xi1>
      %19 = vector.broadcast %cst_10 : f32 to vector<8x256xf32>
      %20 = arith.select %18, %14, %19 : vector<8x256xi1>, vector<8x256xf32>
      %21 = arith.addf %8, %20 : vector<8x256xf32>
      %22 = vector.extract_strided_slice %0 {offsets = [0, 1], sizes = [8, 1], strides = [1, 1]} : vector<8x3xf32> to vector<8x1xf32>
      %23 = vector.shape_cast %22 : vector<8x1xf32> to vector<8xf32>
      %24 = vector.shape_cast %23 : vector<8xf32> to vector<8x1xf32>
      %25 = vector.broadcast %24 : vector<8x1xf32> to vector<8x256xf32>
      %26 = arith.mulf %7, %25 : vector<8x256xf32>
      %27 = arith.addf %21, %26 : vector<8x256xf32>
      %c255_i32 = arith.constant 255 : i32
      %28 = tpu.dynamic_rotate %7 by %c255_i32 dim 1 : vector<8x256xf32>, i32 -> vector<8x256xf32>
      %29 = vector.extract_strided_slice %0 {offsets = [0, 2], sizes = [8, 1], strides = [1, 1]} : vector<8x3xf32> to vector<8x1xf32>
      %30 = vector.shape_cast %29 : vector<8x1xf32> to vector<8xf32>
      %31 = vector.shape_cast %30 : vector<8xf32> to vector<8x1xf32>
      %32 = vector.broadcast %31 : vector<8x1xf32> to vector<8x256xf32>
      %33 = arith.mulf %28, %32 : vector<8x256xf32>
      %c255_i32_11 = arith.constant 255 : i32
      %34 = vector.broadcast %c255_i32_11 : i32 to vector<1x256xi32>
      %35 = arith.cmpi slt, %3, %34 : vector<1x256xi32>
      %cst_12 = arith.constant 0.000000e+00 : f32
      %36 = vector.shape_cast %35 : vector<1x256xi1> to vector<1x256xi1>
      %37 = vector.broadcast %36 : vector<1x256xi1> to vector<8x256xi1>
      %38 = vector.broadcast %cst_12 : f32 to vector<8x256xf32>
      %39 = arith.select %37, %33, %38 : vector<8x256xi1>, vector<8x256xf32>
      %40 = arith.addf %27, %39 : vector<8x256xf32>
      %cst_13 = arith.constant dense<0.000000e+00> : vector<16x256xf32>
      %41 = tpu.matmul %1, %40, %cst_13 {dimension_numbers = #tpu.dot_dimension_numbers<[1], [0], [0], [1], [0, 0, 1, 1], [], []>} : vector<16x8xf32>, vector<8x256xf32>, vector<16x256xf32> -> vector<16x256xf32>
      %42 = vector.broadcast %2 : vector<16x1xf32> to vector<16x256xf32>
      %43 = arith.addf %41, %42 : vector<16x256xf32>
      %cst_14 = arith.constant 0.000000e+00 : f32
      %44 = vector.broadcast %cst_14 : f32 to vector<16x256xf32>
      %45 = arith.maximumf %43, %44 : vector<16x256xf32>
      %46 = arith.index_cast %arg6 : i32 to index
      %c0_15 = arith.constant 0 : index
      %c0_16 = arith.constant 0 : index
      %47 = vector.load %arg5[%46, %c0_15, %c0_16] : memref<4x16x256xf32, #tpu.memory_space<vmem>>, vector<1x16x256xf32>
      %48 = vector.shape_cast %47 : vector<1x16x256xf32> to vector<16x256xf32>
      %49 = vector.shape_cast %45 : vector<16x256xf32> to vector<1x16x256xf32>
      tpu.vector_store %arg5[%46, %c0_15, %c0_16], %49 {strides = array<i32>} : memref<4x16x256xf32, #tpu.memory_space<vmem>>, vector<1x16x256xf32>,
    }
    %c4_i32_5 = arith.constant 4 : i32
    return
  }
  func.func @transform_0(%arg0: i32) -> (i32, i32, i32) {
    %c0_i32 = arith.constant 0 : i32
    %c0_i32_0 = arith.constant 0 : i32
    %c0_i32_1 = arith.constant 0 : i32
    return %arg0, %c0_i32, %c0_i32_0 : i32, i32, i32
  }
  func.func @transform_1(%arg0: i32) -> (i32, i32) {
    %c0_i32 = arith.constant 0 : i32
    %c0_i32_0 = arith.constant 0 : i32
    %c0_i32_1 = arith.constant 0 : i32
    return %c0_i32, %c0_i32_0 : i32, i32
  }
  func.func @transform_2(%arg0: i32) -> (i32, i32) {
    %c0_i32 = arith.constant 0 : i32
    %c0_i32_0 = arith.constant 0 : i32
    %c0_i32_1 = arith.constant 0 : i32
    return %c0_i32, %c0_i32_0 : i32, i32
  }
  func.func @transform_3(%arg0: i32) -> (i32, i32) {
    %c0_i32 = arith.constant 0 : i32
    %c0_i32_0 = arith.constant 0 : i32
    %c0_i32_1 = arith.constant 0 : i32
    return %c0_i32, %c0_i32_0 : i32, i32
  }
  func.func @transform_4(%arg0: i32) -> (i32, i32, i32) {
    %c0_i32 = arith.constant 0 : i32
    %c0_i32_0 = arith.constant 0 : i32
    %c0_i32_1 = arith.constant 0 : i32
    return %arg0, %c0_i32, %c0_i32_0 : i32, i32, i32
  }
}

</mosaic_0001>

<bundles_post_ra>
// kernel: tpu_custom_call.1
= control target key start
LH: loop header
LB: loop body
LE: loop exit
PB: predicated region body
PF: predicated region fallthrough
CT: control target
= control target key end

     0   :  { %9 = vsyncpa [#allocation3], 0  ;;  %s958_s0 = inlined_call_operand.hbm [shape: f32[8,8,256], index: 0, kind: input, shape index: {}]   ;;  %s959_s1 = inlined_call_operand.vmem [shape: f32[8,3], index: 1, kind: input, shape index: {}]   ;;  %s960_s2 = inlined_call_operand.vmem [shape: f32[16,8], index: 2, kind: input, shape index: {}]   ;;  %s961_s3 = inlined_call_operand.vmem [shape: f32[16,1], index: 3, kind: input, shape index: {}]   ;;  %s962_s4 = inlined_call_operand.hbm [shape: f32[8,16,256], index: 4, kind: output, shape index: {}]  }
   0x1   :  { %11 = vsyncpa [#allocation3 + $0x1], 0 }
   0x2   :  { %12 = vsyncpa [#allocation4], 0 }
   0x3   :  { %14 = vsyncpa [#allocation4 + $0x1], 0  ;;  %s737_s15 = smov 0   ;;  %s739_s16 = smov 0  }
   0x4   :  { %s741_s17 = smov 0   ;;  %s743_s18 = smov 0  }
   0x5 LB: > { %s758_s19 = sadd.s32 4294967295, %s694_s18   ;;  %s495_s20 = sadd.s32 4294967294, %s694_s18   ;;  %s694_s18 = sphi %s743_s18, %s975_s18   ;;  %s690_s17 = sphi %s741_s17, %s974_s17   ;;  %s686_s16 = sphi %s739_s16, %s973_s16   ;;  %s682_s15 = sphi %s737_s15, %s972_s15  }
   0x6   : > { %s762_s21 = sadd.s32 1, %s694_s18   ;;  %s27_s22 = sadd.s32 1, %s690_s17 }
   0x7   : > { %s24_s23 = ssub.s32 %s694_s18, %s762_s21  ;;  %p34_p0 = scmp.ne.s32.totalorder %s690_s17, %s686_s16 }
   0x8   : > { %p25_p1 = scmp.eq.s32.totalorder %s24_s23, 0  ;;  %p35_p2 = scmp.eq.s32.totalorder %s694_s18, 0 }
   0x9   : > { %p40_p3 = scmp.ne.s32.totalorder %s686_s16, %s682_s15  ;;  %p41_p4 = scmp.eq.s32.totalorder %s758_s19, 0 }
   0xa   : > { %s774_s24 = scalar_select %p25_p1, %s690_s17, %s27_s22  }
   0xb   : > { %p776_p5 = por %p35_p2, %p34_p0  ;;  %p780_p6 = por %p41_p4, %p40_p3 }
   0xc   : > { %p127_p7 = scmp.eq.s32.totalorder %s758_s19, 1  ;;  %p133_p8 = scmp.eq.s32.totalorder %s495_s20, 1 }
   0xd   : > { %p537_p10 = scmp.lt.s32.totalorder %s694_s18, 2  ;;  %s162_s29 = sand.u32 1, %s690_s17  }
   0xe   : > { %p787_p11 = por %p127_p7, %p34_p0  ;;  %p791_p12 = por %p133_p8, %p40_p3 }
   0xf   : > { %s518_s30 = sshll.u32 %s694_s18, 10  ;;  %s498_s5 = sshll.u32 %s162_s29, 6 }
  0x10   : > { %s966_s27 = scalar_select %p787_p11, 1, 0 }
  0x11   : > { %s967_s28 = scalar_select %p791_p12, 1, 0 }
  0x12   : > { %s800_s8 = scalar_lea.hbm %s958_s0, %s518_s30  ;;  %s166_s9 = scalar_lea.vmem [#allocation2], %s498_s5 }
  0x13   : > { %s174_s10 = sshll.u32 %s166_s9, 4  ;;  %p804_p13 = pnand %p537_p10, %p776_p5  ;;  %s808_s10 = int_to_ptr.vmem [resolvable:$true] %s174_s10 }
  0x14   : > { %s810_s12 = scalar_lea.sflag [#allocation3], %s162_s29  ;;  %s594_s13 = scalar_lea.hbm %s800_s8, 1024 }
  0x15   : > { %p595_p0 = scmp.ne.s32.totalorder %s800_s8, %s594_s13  ;;  %p596_p1 = pneg %p804_p13 }
  0x16   : > { %s599_s22 = scalar_lea.hbm %s958_s0, 2048  ;;  %p600_p4 = scmp.lt.u32.totalorder %s800_s8, %s958_s0 }
  0x17   : > { %p597_p2 = pnand %p596_p1, %p595_p0  ;;  %p601_p5 = scmp.lt.u32.totalorder %s599_s22, %s594_s13 }
  0x18   : > { %p603_p8 = scmp.lt.u32.totalorder %s594_s13, %s800_s8 }
  0x19   : > { %p598_p3 = pneg %p597_p2  ;;  %p602_p7 = por %p601_p5, %p600_p4 }
  0x1b   : > { %p604_p10 = por %p603_p8, %p602_p7 }
  0x1d   : > { %p605_p9 = pnand %p604_p10, %p598_p3 }
  0x1f   : > { %608 = shalt.err (!%p605_p9)
}
  0x20   : > { %s609_s29 = scalar_lea.vmem %s808_s10, 1024  ;;  %s700_s30 = smov [#allocation2]  }
  0x21   : > { %p610_p0 = scmp.ne.s32.totalorder %s808_s10, %s609_s29  ;;  %s614_s5 = sshll.u32 %s700_s30, 4  ;;  %s615_s5 = int_to_ptr.vmem [resolvable:$false] %s614_s5 }
  0x22   : > { %s616_s6 = scalar_lea.vmem %s615_s5, 2048  ;;  %p617_p11 = scmp.lt.s32.totalorder %s808_s10, %s615_s5 }
  0x23   : > { %p612_p2 = pnand %p610_p0, %p596_p1  ;;  %p618_p4 = scmp.lt.s32.totalorder %s616_s6, %s609_s29 }
  0x25   : > { %p613_p12 = pneg %p612_p2  ;;  %p619_p5 = por %p618_p4, %p617_p11 }
  0x27   : > { %p620_p7 = pnand %p619_p5, %p613_p12 }
  0x29   : > { %623 = shalt.err (!%p620_p7)
}
  0x2a   : > { %s701_s7 = smov 256   ;;  %s702_s9 = smov 16  }
  0x2b   : > { %532 = dma.hbm_to_vmem [thread:$0]  (!%p804_p13), %s800_s8, 1024, %s808_s10, %s810_s12, %s701_s7, %s701_s7, %s702_s9  }
  0x2c   : > { %p502_p9 = scmp.ge.s32.totalorder %s694_s18, 1  ;;  %p182_p1 = scmp.lt.s32.totalorder %s694_s18, 3 }
  0x2e   : > { %p183_p3 = pnand %p502_p9, %p182_p1 }
  0x2f   : > { %s841_s13 = sand.u32 (!%p183_p3), 1, %s686_s16  }
  0x30   : > { %186 = sbr.rel (%p183_p3) target bundleno = 443 (0x1bb), region = 36  ;;  %s503_s14 = sshll.u32 (!%p183_p3), %s841_s13, 6 }
  0x31   : > { %s189_s20 = scalar_lea.sflag (!%p183_p3), [#allocation3], %s841_s13  ;;  %s845_s22 = scalar_lea.vmem (!%p183_p3), [#allocation2], %s503_s14 }
  0x37   : > { %673 = dma.done.wait (%p780_p6), %s189_s20, 1024  }
  0x38   : > { %675 = vsyncadd (%p780_p6), %s189_s20, 4294966272  ;;  %s504_s8 = sshll.u32 %s841_s13, 7  ;;  %v224_v0 = vlaneseq  ;;  %v860_v3 = vld [vmem:[%s959_s1] sm:$0xff]  ;;  %v870_v5 = vld [vmem:[%s960_s2 + $0x8] sm:$0xff]  ;;  %s884_s9 = smov 0  }
  0x39   : > { %v865_v4 = vld [vmem:[%s960_s2] sm:$0xff]  ;;  %v880_v7 = vld [vmem:[%s961_s3 + $0x8] sm:$0xff]  ;;  %s882_s7 = scalar_lea.vmem [#allocation5], %s504_s8 }
  0x3a   : > { %v852_v1 = vand.u32 127, %v224_v0  ;;  %v875_v6 = vld [vmem:[%s961_s3] sm:$0xff] }
  0x3c   : > { %v855_v2 = vadd.s32 128, %v852_v1 }
  0x3d LB: >> { %v703_v8 = vmov 2   ;;  %v704_v9 = vmov 0   ;;  %s519_s14 = sshll.u32 %s698_s9, 4  ;;  %v705_v11 = vmov 1   ;;  %s706_s8 = smov 1   ;;  %v708_v13 = vmov 0.0   ;;  %s698_s9 = sphi %s884_s9, %s232_s9  }
  0x3e   : >> { %591 = vset.pattern.permute.xlu1 %v703_v8  ;;  %589 = vset.pattern.permute.xlu0 %v704_v9  ;;  %s235_s20 = scalar_lea.vmem %s845_s22, %s519_s14 [#allocation2]  ;;  %s707_s10 = smov 127   ;;  %vm242_vm0 = vcmp.lt.s32.totalorder %v852_v1, 1  ;;  %vm252_vm1 = vcmp.ge.s32.totalorder %v852_v1, 1  ;;  %vm274_vm2 = vcmp.lt.s32.totalorder %v852_v1, 127  ;;  %vm284_vm3 = vcmp.lt.s32.totalorder %v855_v2, 255 }
  0x3f   : >> { %278 = vperm.xlu1 %591, %v860_v3   ;;  %247 = vperm.xlu0 %589, %v860_v3   ;;  %v236_v10 = vld [vmem:[%s235_s20] sm:$0xff]  ;;  %v237_v12 = vld [vmem:[%s235_s20 + $0x8] sm:$0xff]  ;;  %vm303_vm4 = vcmask 64512   ;;  %s520_s11 = sshll.u32 %s698_s9, 5  ;;  %s232_s9 = sadd.s32 1, %s698_s9  }
  0x40   : >> { %374 = vmatprep.mubr.f32.mxu0 %v708_v13  ;;  %380 = vmatprep.mubr.f32.mxu1 %v708_v13  ;;  %s393_s12 = scalar_lea.vmem %s882_s7, %s520_s11 [#allocation5]  ;;  %p229_p6 = scmp.ge.s32.totalorder %s232_s9, 4  }
  0x41   : > { %s522_s23 = sshll.u32 (%p229_p6), %s758_s19, 11  ;;  %s413_s30 = sshll.u32 (%p229_p6), %s882_s7, 4  ;;  %s914_s30 = int_to_ptr.vmem [resolvable:$true] %s413_s30 }
  0x42   : > { %s911_s29 = scalar_lea.hbm (%p229_p6), %s962_s4, %s522_s23  ;;  %s399_s5 = scalar_lea.sflag (%p229_p6), [#allocation4], %s841_s13 }
  0x43   : >> { %590 = vset.pattern.permute.xlu0 %v705_v11  ;;  %238 = vrot.lane.b32.xlu1 %v236_v10, %s706_s8  ;;  %s624_s6 = scalar_lea.vmem (%p229_p6), %s914_s30, 2048  ;;  %p969_p12 = scmp.ne.s32.totalorder (%p229_p6), %s966_s27, 0 }
  0x44   : >> { %263 = vperm.xlu0 %590, %v860_v3   ;;  %593 = vset.pattern.permute.xlu1 %v704_v9  ;;  %p625_p11 = scmp.ne.s32.totalorder (%p229_p6), %s914_s30, %s624_s6  ;;  %s709_s22 = smov (%p229_p6), [#allocation5]  }
  0x45   : > { %s628_s9 = sshll.u32 (%p229_p6), %s709_s22, 4  ;;  %s629_s9 = int_to_ptr.vmem [resolvable:$false] %s628_s9 }
  0x46   : > { %p626_p13 = pnand (%p229_p6), %p625_p11, %p969_p12  ;;  %s630_s19 = scalar_lea.vmem (%p229_p6), %s629_s9, 4096 }
  0x47   : >> { %240 = vrot.lane.b32.xlu1 %v237_v12, %s706_s8  ;;  %p631_p10 = scmp.lt.s32.totalorder (%p229_p6), %s914_s30, %s629_s9  ;;  %p632_p0 = scmp.lt.s32.totalorder (%p229_p6), %s630_s19, %s624_s6 }
  0x48   : >> { %270 = vrot.lane.b32.xlu0 %v236_v10, %s707_s10  ;;  %p627_p8 = pneg (%p229_p6), %p626_p13 }
  0x49   : >> { %592 = vset.pattern.permute.xlu0 %v704_v9  ;;  %p633_p2 = por (%p229_p6), %p632_p0, %p631_p10 }
  0x4b   : >> { %272 = vrot.lane.b32.xlu1 %v237_v12, %s707_s10  ;;  %p634_p4 = pnand (%p229_p6), %p633_p2, %p627_p8 }
  0x4c   : >> { %295 = vperm.xlu0 %592, %v875_v6  }
  0x4f   : >> { %300 = vperm.xlu1 %593, %v880_v7  }
  0xbe   : >> { %v279_v14 = vpop.permute.xlu1 %278  ;;  %v248_v15 = vpop.permute.xlu0 %247 }
  0xc2   : >> { %v239_v16 = vpop.permute.xlu1 %238 }
  0xc3   : >> { %v264_v17 = vpop.permute.xlu0 %263 }
  0xc4   : >> { %v267_v23 = vmul.f32 %v264_v17, %v237_v12  ;;  %v266_v25 = vmul.f32 %v264_v17, %v236_v10 }
  0xc6   : >> { %v241_v18 = vpop.permute.xlu1 %240 }
  0xc7   : >> { %v243_v19 = vsel %vm242_vm0, %v239_v16, %v241_v18  ;;  %v244_v20 = vsel %vm242_vm0, %v241_v18, %v239_v16  ;;  %v271_v22 = vpop.permute.xlu0 %270 }
  0xc8   : >> { %v250_v21 = vmul.f32 %v248_v15, %v244_v20  ;;  %v251_v24 = vmul.f32 %v248_v15, %v243_v19 }
  0xca   : >> { %v273_v26 = vpop.permute.xlu1 %272  ;;  %v258_v27 = vsel %vm252_vm1, %v250_v21, 0.0  ;;  %v269_v33 = vadd.f32 %v267_v23, %v251_v24 }
  0xcb   : >> { %v275_v28 = vsel %vm274_vm2, %v271_v22, %v273_v26  ;;  %v276_v29 = vsel %vm274_vm2, %v273_v26, %v271_v22  ;;  %v268_v32 = vadd.f32 %v266_v25, %v258_v27  ;;  %v296_v37 = vpop.permute.xlu0 %295 }
  0xcc   : >> { %v281_v30 = vmul.f32 %v279_v14, %v275_v28  ;;  %v282_v31 = vmul.f32 %v279_v14, %v276_v29 }
  0xce   : >> { %v290_v34 = vsel %vm284_vm3, %v282_v31, 0.0  ;;  %v291_v36 = vadd.f32 %v281_v30, %v268_v32  ;;  %v301_v38 = vpop.permute.xlu1 %300 }
  0xcf   : >> { %v292_v35 = vadd.f32 %v290_v34, %v269_v33 }
  0xd1   : >> { %310 = vmatprep.subr.mxu0 %v292_v35  ;;  %523 = vmatprep.subr.mxu1 %v292_v35 }
  0xd2   : >> { %311 = vmatpush1.msra.mxu0 %v291_v36  ;;  %524 = vmatpush1.msra.mxu1 %v291_v36 }
  0xd3   : >> { %507 = vmatmul.mubr.msk.f32.vlgmr.msra.gmra.mrb[0].mxu0 %vm303_vm4, %v865_v4  ;;  %508 = vmatmul.mubr.msk.f32.vlgmr.msra.gmra.mrb[0].mxu1 %vm303_vm4, %v870_v5 }
 0x1a6   : >> { %v376_v39 = vpop.f32.mrb[0].mxu0  ;;  %v382_v40 = vpop.f32.mrb[0].mxu1  ;;  %231 = sbr.rel (!%p229_p6) target bundleno = 61 (0x3d), region = 90 }
 0x1a7   : >> { %v377_v41 = vadd.f32 %v376_v39, %v296_v37  ;;  %v383_v42 = vadd.f32 %v382_v40, %v301_v38  ;;  %v378_v43 = vpop.f32.mrb[1].mxu0  ;;  %v384_v44 = vpop.f32.mrb[1].mxu1 }
 0x1a8   : >> { %v379_v45 = vadd.f32 %v378_v43, %v296_v37  ;;  %v385_v46 = vadd.f32 %v384_v44, %v301_v38 }
 0x1a9   : >> { %v387_v47 = vmax.f32 %v377_v41, 0.0  ;;  %v389_v48 = vmax.f32 %v383_v42, 0.0 }
 0x1aa   : >> { %v388_v49 = vmax.f32 %v379_v45, 0.0  ;;  %v390_v50 = vmax.f32 %v385_v46, 0.0 }
 0x1ab   : >> { %394 = vst [vmem:[%s393_s12] sm:$0xff] %v387_v47  ;;  %396 = vst [vmem:[%s393_s12 + $0x10] sm:$0xff] %v389_v48 }
 0x1ac   : >> { %395 = vst [vmem:[%s393_s12 + $0x8] sm:$0xff] %v388_v49  ;;  %397 = vst [vmem:[%s393_s12 + $0x18] sm:$0xff] %v390_v50 }
 0x1ad   : > { %637 = shalt.err (!%p634_p4)
}
 0x1ae   : > { %s638_s7 = scalar_lea.hbm %s911_s29, 2048  ;;  %s642_s8 = scalar_lea.hbm %s962_s4, 4096 }
 0x1af   : > { %p639_p5 = scmp.ne.s32.totalorder %s911_s29, %s638_s7  ;;  %p643_p1 = scmp.lt.u32.totalorder %s911_s29, %s962_s4 }
 0x1b0   : > { %p644_p3 = scmp.lt.u32.totalorder %s642_s8, %s638_s7  ;;  %p646_p11 = scmp.lt.u32.totalorder %s638_s7, %s911_s29 }
 0x1b1   : > { %p640_p7 = pnand %p639_p5, %p969_p12 }
 0x1b2   : > { %p645_p6 = por %p644_p3, %p643_p1 }
 0x1b3   : > { %p641_p9 = pneg %p640_p7 }
 0x1b4   : > { %p647_p13 = por %p646_p11, %p645_p6 }
 0x1b6   : > { %p648_p8 = pnand %p647_p13, %p641_p9 }
 0x1b8   : > { %651 = shalt.err (!%p648_p8)
}
 0x1b9   : > { %s710_s12 = smov 256   ;;  %s711_s23 = smov 16  }
 0x1ba   : > { %527 = dma.vmem_to_hbm [thread:$0]  (%p969_p12), %s914_s30, 2048, %s911_s29, %s399_s5, %s710_s12, %s710_s12, %s711_s23  }
 0x1bb PF: > { %s428_s26 = sand.u32 1, %s682_s15   ;;  %p970_p10 = scmp.ne.s32.totalorder %s967_s28, 0 }
 0x1bc   : > { %p971_p0 = scmp.ge.s32.totalorder %s694_s18, 2  ;;  %s429_s25 = scalar_lea.sflag [#allocation4], %s428_s26 }
 0x1be   : > { %p534_p2 = pnand %p971_p0, %p970_p10 }
 0x1c0   : > { %677 = dma.done.wait (!%p534_p2), %s429_s25, 2048  }
 0x1c1   : > { %679 = vsyncadd (!%p534_p2), %s429_s25, 4294965248  ;;  %p17_p4 = scmp.ge.s32.totalorder %s762_s21, 4   ;;  %s972_s15 = smov %s686_s16 }
 0x1c2   : > { %s973_s16 = smov %s690_s17  ;;  %s974_s17 = smov %s774_s24 }
 0x1c3   : > { %s975_s18 = smov %s762_s21  ;;  %19 = sbr.rel (!%p17_p4) target bundleno = 5 (0x5), region = 101 }
 0x1ca   :  { %434 = vsyncpa [#allocation3], 1 }
 0x1cb   :  { %436 = vsyncpa [#allocation3 + $0x1], 1 }
 0x1cc   :  { %437 = vsyncpa [#allocation4], 1 }
 0x1cd   :  { %439 = vsyncpa [#allocation4 + $0x1], 1 }

</bundles_post_ra>
